<compile_context>
chip_gen: v5e
topology: v5e:2x2
jax: 0.10.0
libtpu: 0.0.40
codegen_flags: <defaults>
</compile_context>

<pallas_src>
import jax
import jax.numpy as jnp
from jax.experimental import pallas as pl
from jax.experimental.pallas import tpu as pltpu


# ----------------------------- Pallas kernel -------------------------------

def _transition_kernel(z_ref, a_ref, w1_ref, b1_ref, w2_ref, b2_ref,
                       w3_ref, b3_ref, o_ref):
    # cat(z, a) along lanes (32 + 8 = 40 <= 128 lanes), bf16 operands.
    x = jnp.concatenate(
        [z_ref[...].astype(jnp.bfloat16), a_ref[...].astype(jnp.bfloat16)],
        axis=-1)

    # h1 = relu(x @ W1 + b1)   -- single dot, f32 accumulation on the MXU.
    h1 = jnp.dot(x, w1_ref[...], preferred_element_type=jnp.float32)
    h1 = jnp.maximum(h1 + b1_ref[...], 0.0).astype(jnp.bfloat16)

    # h2 = relu(h1 @ W2 + b2)
    h2 = jnp.dot(h1, w2_ref[...], preferred_element_type=jnp.float32)
    h2 = jnp.maximum(h2 + b2_ref[...], 0.0).astype(jnp.bfloat16)

    # out = h2 @ W3 + b3   (no activation)
    out = jnp.dot(h2, w3_ref[...], preferred_element_type=jnp.float32)
    o_ref[...] = (out + b3_ref[...]).astype(o_ref.dtype)


def _round_up(x, n):
    return -(-x // n) * n


def transition_forward(params, z, a, *, tm_max=2048):
    """z: (B, z_dim) f32, a: (B, action_dim) f32 -> (B, z_dim) f32."""
    m, zd = z.shape
    ad = a.shape[1]
    hidden = params["w2"].shape[1]
    z_out = params["w3"].shape[1]

    if m <= 256:
        # Small batch: one grid step, block == full array dims (no (8,128)
        # constraint, no padding copy).  Fixed-overhead bound by nature.
        tile_m = m
    else:
        # Large batch: big tiles (amortize ~0.35us/step), but keep >= 8 grid
        # steps when possible so v7x megacore gets multiple parallel steps.
        tile_m = min(tm_max, max(256, _round_up(pl.cdiv(m, 8), 256)))
    grid = (pl.cdiv(m, tile_m),)

    return pl.pallas_call(
        _transition_kernel,
        out_shape=jax.ShapeDtypeStruct((m, z_out), jnp.float32),
        grid=grid,
        in_specs=[
            pl.BlockSpec((tile_m, zd), lambda i: (i, 0)),         # z tile
            pl.BlockSpec((tile_m, ad), lambda i: (i, 0)),         # a tile
            pl.BlockSpec((zd + ad, hidden), lambda i: (0, 0)),    # W1 (resident)
            pl.BlockSpec((1, hidden), lambda i: (0, 0)),          # b1
            pl.BlockSpec((hidden, hidden), lambda i: (0, 0)),     # W2
            pl.BlockSpec((1, hidden), lambda i: (0, 0)),          # b2
            pl.BlockSpec((hidden, z_out), lambda i: (0, 0)),      # W3
            pl.BlockSpec((1, z_out), lambda i: (0, 0)),           # b3
        ],
        out_specs=pl.BlockSpec((tile_m, z_out), lambda i: (i, 0)),
        compiler_params=pltpu.CompilerParams(
            dimension_semantics=("parallel",)),
    )(z, a, params["w1"], params["b1"], params["w2"], params["b2"],
      params["w3"], params["b3"])


# ------------------------------- Params -------------------------------------

def init_transition_params(key, z_dim, action_dim, hidden_dim=64):
    """Weights pre-transposed to (in, out), stored bf16 (f32 accumulation in
    the kernel); biases f32 as (1, N) rows."""
    ks = jax.random.split(key, 6)
    scale = 0.1
    in_dim = z_dim + action_dim

    def w(k, shape):
        return (jax.random.normal(k, shape, jnp.float32) * scale).astype(
            jnp.bfloat16)

    def b(k, n):
        return (jax.random.normal(k, (n,), jnp.float32) * scale).reshape(1, n)

    return {
        "w1": w(ks[0], (in_dim, hidden_dim)),
        "b1": b(ks[1], hidden_dim),
        "w2": w(ks[2], (hidden_dim, hidden_dim)),
        "b2": b(ks[3], hidden_dim),
        "w3": w(ks[4], (hidden_dim, z_dim)),
        "b3": b(ks[5], z_dim),
    }


def _reference_forward(params, z, a):
    """Pure-JAX reference (f32 HIGHEST precision, same bf16 weights)."""
    hp = jax.lax.Precision.HIGHEST
    x = jnp.concatenate([z, a], axis=-1)
    h1 = jnp.maximum(
        jnp.dot(x, params["w1"].astype(jnp.float32), precision=hp)
        + params["b1"], 0.0)
    h2 = jnp.maximum(
        jnp.dot(h1, params["w2"].astype(jnp.float32), precision=hp)
        + params["b2"], 0.0)
    return (jnp.dot(h2, params["w3"].astype(jnp.float32), precision=hp)
            + params["b3"])


# --------------------------------- Main --------------------------------------

if __name__ == "__main__":
    z_dim = 32
    action_dim = 8

    key = jax.random.PRNGKey(0)
    k_param, k_z, k_a = jax.random.split(key, 3)
    params = init_transition_params(k_param, z_dim, action_dim)

    fwd = jax.jit(transition_forward)

    # 1) Tiny batch (single full-array block path).
    batch = 2
    z = jax.random.normal(k_z, (batch, z_dim), jnp.float32)
    a = jax.random.normal(k_a, (batch, action_dim), jnp.float32)
    out = jax.block_until_ready(fwd(params, z, a))
    assert out.shape == (batch, z_dim), out.shape
    ref = _reference_forward(params, z, a)
    # bf16 operands (f32 accumulation) vs f32-HIGHEST reference -> loosened tol.
    assert jnp.allclose(out, ref, rtol=2e-2, atol=2e-2), \
        float(jnp.max(jnp.abs(out - ref)))

    # 2) Multi-step tiled path with a ragged (masked) edge block, no padding.
    batch2 = 600
    z2 = jax.random.normal(jax.random.PRNGKey(1), (batch2, z_dim), jnp.float32)
    a2 = jax.random.normal(jax.random.PRNGKey(2), (batch2, action_dim),
                           jnp.float32)
    out2 = jax.block_until_ready(fwd(params, z2, a2))
    assert out2.shape == (batch2, z_dim), out2.shape
    ref2 = _reference_forward(params, z2, a2)
    assert jnp.allclose(out2, ref2, rtol=2e-2, atol=2e-2), \
        float(jnp.max(jnp.abs(out2 - ref2)))

    print("KERNEL_OK")
</pallas_src>

<mosaic_0001>
module attributes {stable_mosaic.version = 11 : i64} {
  func.func @_transition_kernel(%arg0: i32, %arg1: memref<2x32xf32, #tpu.memory_space<vmem>>, %arg2: memref<2x8xf32, #tpu.memory_space<vmem>>, %arg3: memref<40x64xbf16, #tpu.memory_space<vmem>>, %arg4: memref<1x64xf32, #tpu.memory_space<vmem>>, %arg5: memref<64x64xbf16, #tpu.memory_space<vmem>>, %arg6: memref<1x64xf32, #tpu.memory_space<vmem>>, %arg7: memref<64x32xbf16, #tpu.memory_space<vmem>>, %arg8: memref<1x32xf32, #tpu.memory_space<vmem>>, %arg9: memref<2x32xf32, #tpu.memory_space<vmem>>) attributes {dimension_semantics = [#tpu.dimension_semantics<parallel>], iteration_bounds = array<i64: 1>, scalar_prefetch = 0 : i64, scratch_operands = 0 : i64, tpu.core_type = #tpu.core_type<tc>, window_params = [{transform_indices = @transform_0, window_bounds = array<i64: 2, 32>}, {transform_indices = @transform_1, window_bounds = array<i64: 2, 8>}, {pipeline_mode = #tpu.pipeline_mode<synchronous>, transform_indices = @transform_2, window_bounds = array<i64: 40, 64>}, {pipeline_mode = #tpu.pipeline_mode<synchronous>, transform_indices = @transform_3, window_bounds = array<i64: 1, 64>}, {pipeline_mode = #tpu.pipeline_mode<synchronous>, transform_indices = @transform_4, window_bounds = array<i64: 64, 64>}, {pipeline_mode = #tpu.pipeline_mode<synchronous>, transform_indices = @transform_5, window_bounds = array<i64: 1, 64>}, {pipeline_mode = #tpu.pipeline_mode<synchronous>, transform_indices = @transform_6, window_bounds = array<i64: 64, 32>}, {pipeline_mode = #tpu.pipeline_mode<synchronous>, transform_indices = @transform_7, window_bounds = array<i64: 1, 32>}, {transform_indices = @transform_8, window_bounds = array<i64: 2, 32>}]} {
    %c0 = arith.constant 0 : index
    %c0_0 = arith.constant 0 : index
    %0 = vector.load %arg1[%c0, %c0_0] : memref<2x32xf32, #tpu.memory_space<vmem>>, vector<2x32xf32>
    %1 = arith.truncf %0 : vector<2x32xf32> to vector<2x32xbf16>
    %c0_1 = arith.constant 0 : index
    %c0_2 = arith.constant 0 : index
    %2 = vector.load %arg2[%c0_1, %c0_2] : memref<2x8xf32, #tpu.memory_space<vmem>>, vector<2x8xf32>
    %3 = arith.truncf %2 : vector<2x8xf32> to vector<2x8xbf16>
    %4 = tpu.concatenate %1, %3 in 1 : vector<2x32xbf16>, vector<2x8xbf16> -> vector<2x40xbf16>
    %c0_3 = arith.constant 0 : index
    %c0_4 = arith.constant 0 : index
    %5 = vector.load %arg3[%c0_3, %c0_4] : memref<40x64xbf16, #tpu.memory_space<vmem>>, vector<40x64xbf16>
    %cst = arith.constant dense<0.000000e+00> : vector<2x64xf32>
    %6 = tpu.matmul %4, %5, %cst {dimension_numbers = #tpu.dot_dimension_numbers<[1], [0], [0], [1], [0, 0, 1, 1], [], []>} : vector<2x40xbf16>, vector<40x64xbf16>, vector<2x64xf32> -> vector<2x64xf32>
    %c0_5 = arith.constant 0 : index
    %c0_6 = arith.constant 0 : index
    %7 = vector.load %arg4[%c0_5, %c0_6] : memref<1x64xf32, #tpu.memory_space<vmem>>, vector<1x64xf32>
    %8 = vector.broadcast %7 : vector<1x64xf32> to vector<2x64xf32>
    %9 = arith.addf %6, %8 : vector<2x64xf32>
    %cst_7 = arith.constant 0.000000e+00 : f32
    %10 = vector.broadcast %cst_7 : f32 to vector<2x64xf32>
    %11 = arith.maximumf %9, %10 : vector<2x64xf32>
    %12 = arith.truncf %11 : vector<2x64xf32> to vector<2x64xbf16>
    %c0_8 = arith.constant 0 : index
    %c0_9 = arith.constant 0 : index
    %13 = vector.load %arg5[%c0_8, %c0_9] : memref<64x64xbf16, #tpu.memory_space<vmem>>, vector<64x64xbf16>
    %cst_10 = arith.constant dense<0.000000e+00> : vector<2x64xf32>
    %14 = tpu.matmul %12, %13, %cst_10 {dimension_numbers = #tpu.dot_dimension_numbers<[1], [0], [0], [1], [0, 0, 1, 1], [], []>} : vector<2x64xbf16>, vector<64x64xbf16>, vector<2x64xf32> -> vector<2x64xf32>
    %c0_11 = arith.constant 0 : index
    %c0_12 = arith.constant 0 : index
    %15 = vector.load %arg6[%c0_11, %c0_12] : memref<1x64xf32, #tpu.memory_space<vmem>>, vector<1x64xf32>
    %16 = vector.broadcast %15 : vector<1x64xf32> to vector<2x64xf32>
    %17 = arith.addf %14, %16 : vector<2x64xf32>
    %cst_13 = arith.constant 0.000000e+00 : f32
    %18 = vector.broadcast %cst_13 : f32 to vector<2x64xf32>
    %19 = arith.maximumf %17, %18 : vector<2x64xf32>
    %20 = arith.truncf %19 : vector<2x64xf32> to vector<2x64xbf16>
    %c0_14 = arith.constant 0 : index
    %c0_15 = arith.constant 0 : index
    %21 = vector.load %arg7[%c0_14, %c0_15] : memref<64x32xbf16, #tpu.memory_space<vmem>>, vector<64x32xbf16>
    %cst_16 = arith.constant dense<0.000000e+00> : vector<2x32xf32>
    %22 = tpu.matmul %20, %21, %cst_16 {dimension_numbers = #tpu.dot_dimension_numbers<[1], [0], [0], [1], [0, 0, 1, 1], [], []>} : vector<2x64xbf16>, vector<64x32xbf16>, vector<2x32xf32> -> vector<2x32xf32>
    %c0_17 = arith.constant 0 : index
    %c0_18 = arith.constant 0 : index
    %23 = vector.load %arg8[%c0_17, %c0_18] : memref<1x32xf32, #tpu.memory_space<vmem>>, vector<1x32xf32>
    %24 = vector.broadcast %23 : vector<1x32xf32> to vector<2x32xf32>
    %25 = arith.addf %22, %24 : vector<2x32xf32>
    %c0_19 = arith.constant 0 : index
    %c0_20 = arith.constant 0 : index
    %26 = vector.load %arg9[%c0_19, %c0_20] : memref<2x32xf32, #tpu.memory_space<vmem>>, vector<2x32xf32>
    tpu.vector_store %arg9[%c0_19, %c0_20], %25 {strides = array<i32>} : memref<2x32xf32, #tpu.memory_space<vmem>>, vector<2x32xf32>,
    return
  }
  func.func @transform_0(%arg0: i32) -> (i32, i32) {
    %c0_i32 = arith.constant 0 : i32
    %c0_i32_0 = arith.constant 0 : i32
    return %arg0, %c0_i32 : i32, i32
  }
  func.func @transform_1(%arg0: i32) -> (i32, i32) {
    %c0_i32 = arith.constant 0 : i32
    %c0_i32_0 = arith.constant 0 : i32
    return %arg0, %c0_i32 : i32, i32
  }
  func.func @transform_2(%arg0: i32) -> (i32, i32) {
    %c0_i32 = arith.constant 0 : i32
    %c0_i32_0 = arith.constant 0 : i32
    %c0_i32_1 = arith.constant 0 : i32
    return %c0_i32, %c0_i32_0 : i32, i32
  }
  func.func @transform_3(%arg0: i32) -> (i32, i32) {
    %c0_i32 = arith.constant 0 : i32
    %c0_i32_0 = arith.constant 0 : i32
    %c0_i32_1 = arith.constant 0 : i32
    return %c0_i32, %c0_i32_0 : i32, i32
  }
  func.func @transform_4(%arg0: i32) -> (i32, i32) {
    %c0_i32 = arith.constant 0 : i32
    %c0_i32_0 = arith.constant 0 : i32
    %c0_i32_1 = arith.constant 0 : i32
    return %c0_i32, %c0_i32_0 : i32, i32
  }
  func.func @transform_5(%arg0: i32) -> (i32, i32) {
    %c0_i32 = arith.constant 0 : i32
    %c0_i32_0 = arith.constant 0 : i32
    %c0_i32_1 = arith.constant 0 : i32
    return %c0_i32, %c0_i32_0 : i32, i32
  }
  func.func @transform_6(%arg0: i32) -> (i32, i32) {
    %c0_i32 = arith.constant 0 : i32
    %c0_i32_0 = arith.constant 0 : i32
    %c0_i32_1 = arith.constant 0 : i32
    return %c0_i32, %c0_i32_0 : i32, i32
  }
  func.func @transform_7(%arg0: i32) -> (i32, i32) {
    %c0_i32 = arith.constant 0 : i32
    %c0_i32_0 = arith.constant 0 : i32
    %c0_i32_1 = arith.constant 0 : i32
    return %c0_i32, %c0_i32_0 : i32, i32
  }
  func.func @transform_8(%arg0: i32) -> (i32, i32) {
    %c0_i32 = arith.constant 0 : i32
    %c0_i32_0 = arith.constant 0 : i32
    return %arg0, %c0_i32 : i32, i32
  }
}

</mosaic_0001>

<bundles_post_ra>
// kernel: transition_forward.1
= control target key start
LH: loop header
LB: loop body
LE: loop exit
PB: predicated region body
PF: predicated region fallthrough
CT: control target
= control target key end

     0   :  { %13 = vsyncpa [#allocation3], 0  ;;  %s440_s0 = inlined_call_operand.vmem [shape: f32[2,32], index: 0, kind: input, shape index: {}]   ;;  %s441_s1 = inlined_call_operand.vmem [shape: f32[2,8], index: 1, kind: input, shape index: {}]   ;;  %s442_s2 = inlined_call_operand.hbm [shape: bf16[40,64], index: 2, kind: input, shape index: {}]   ;;  %s443_s3 = inlined_call_operand.vmem [shape: f32[1,64], index: 3, kind: input, shape index: {}]   ;;  %s444_s4 = inlined_call_operand.vmem [shape: bf16[64,64], index: 4, kind: input, shape index: {}]   ;;  %s445_s5 = inlined_call_operand.vmem [shape: f32[1,64], index: 5, kind: input, shape index: {}]   ;;  %s446_s6 = inlined_call_operand.vmem [shape: bf16[64,32], index: 6, kind: input, shape index: {}]   ;;  %s447_s7 = inlined_call_operand.vmem [shape: f32[1,32], index: 7, kind: input, shape index: {}]   ;;  %s448_s8 = inlined_call_operand.hbm [shape: f32[2,32], index: 8, kind: output, shape index: {}]  }
   0x1   :  { %14 = vsyncpa [#allocation4], 0  ;;  %s23_s29 = sshll.u32 %s442_s2, 4  ;;  %s345_s30 = smov [#allocation2]   ;;  %s24_s29 = int_to_ptr.hbm [resolvable:$true] %s23_s29 }
   0x2   :  { %s25_s9 = sshll.u32 %s345_s30, 4  ;;  %s346_s10 = smov 64   ;;  %s26_s9 = int_to_ptr.vmem [resolvable:$true] %s25_s9 }
   0x3   :  { %s347_s11 = smov 4  }
   0x4   :  { %31 = dma.hbm_to_vmem [thread:$0]  %s24_s29, 320, %s26_s9, [#allocation3], %s346_s10, %s346_s10, %s347_s11  }
   0x5   :  { %341 = dma.done.wait [#allocation3], 320  }
   0x6   :  { %342 = vsyncadd [#allocation3], 4294966976  ;;  %v49_v0 = vld [vmem:[%s441_s1] sm:$0x3]  ;;  %v64_v1 = vld [vmem:[#allocation2 + $0x10] sm:$0xf] }
   0x7   :  { %v50_v2 = vpack.c.bf16 %v49_v0, %v49_v0  ;;  %v78_v3 = vunpack.c.l.b16 %v64_v1  ;;  %vm87_vm0 = vcmask 1043456   ;;  %v276_v8 = vld [vmem:[#allocation2 + $0x8] sm:$0xff]  ;;  %s348_s2 = smov 32   ;;  %v275_v9 = vld [vmem:[#allocation2] sm:$0xff]  ;;  %v280_v10 = vld [vmem:[%s444_s4 + $0x18] sm:$0xff]  ;;  %vm56_vm1 = vcmask 261120  }
   0x8   :  { %150 = vmatpush.bf16.msra.mxu1 %v280_v10  ;;  %v279_v11 = vld [vmem:[%s444_s4 + $0x10] sm:$0xff]  ;;  %v47_v12 = vld [vmem:[%s440_s0] sm:$0x3]  ;;  %vm84_vm2 = vcmask 326656   ;;  %v278_v16 = vld [vmem:[%s444_s4 + $0x8] sm:$0xff]  ;;  %vm142_vm3 = vcmask 523264  }
   0x9   :  { %v52_v4 = vunpack.c.l.b16 %v50_v2  ;;  %v81_v5 = vpack.c.b16 %v78_v3, %v78_v3  ;;  %v48_v13 = vpack.c.bf16 %v47_v12, %v47_v12  ;;  %v277_v17 = vld [vmem:[%s444_s4] sm:$0xff]  ;;  %v284_v18 = vld [vmem:[%s446_s6 + $0x18] sm:$0xff]  ;;  %v283_v19 = vld [vmem:[%s446_s6 + $0x10] sm:$0xff]  ;;  %s349_s12 = smov [#allocation5]   ;;  %vm213_vm4 = vcmask 254976  }
   0xa   :  { %204 = vmatpush.bf16.msra.mxu2 %v284_v18  ;;  %v290_v20 = vld [vmem:[%s443_s3] ss:$0 sm:$0xff]  ;;  %v282_v26 = vld [vmem:[%s446_s6 + $0x8] sm:$0xff]  ;;  %s220_s13 = sshll.u32 %s349_s12, 4  ;;  %s221_s13 = int_to_ptr.vmem [resolvable:$true] %s220_s13 }
   0xb   :  { %v53_v6 = vpack.c.b16 %v52_v4, %v52_v4  ;;  %v89_v7 = vsel %vm87_vm0, %v81_v5, 0  ;;  %v281_v27 = vld [vmem:[%s446_s6] sm:$0xff]  ;;  %s222_s6 = sshll.u32 %s448_s8, 4  ;;  %s223_s6 = int_to_ptr.hbm [resolvable:$true] %s222_s6 }
   0xc   :  { %96 = vmatpush.bf16.msra.mxu0 %v89_v7  ;;  %151 = vmatpush.bf16.msra.mxu1 %v279_v11  ;;  %v291_v28 = vld [vmem:[%s445_s5] ss:$0 sm:$0xff] }
   0xd   :  { %54 = vrot.lane.b32.xlu0 %v53_v6, %s348_s2  ;;  %v292_v34 = vld [vmem:[%s447_s7] ss:$0 sm:$0xff] }
   0xe   :  { %205 = vmatpush.bf16.msra.mxu2 %v283_v19 }
  0x10   :  { %97 = vmatpush.bf16.msra.mxu0 %v276_v8  ;;  %152 = vmatpush.bf16.msra.mxu1 %v278_v16 }
  0x12   :  { %206 = vmatpush.bf16.msra.mxu2 %v282_v26 }
  0x14   :  { %98 = vmatpush.bf16.msra.mxu0 %v275_v9  ;;  %153 = vmatpush.bf16.msra.mxu1 %v277_v17 }
  0x16   :  { %207 = vmatpush.bf16.msra.mxu2 %v281_v27 }
  0x7f   :  { %v55_v14 = vpop.permute.xlu0 %54 }
  0x80   :  { %v59_v15 = vsel %vm56_vm1, %v48_v13, %v55_v14 }
  0x81   :  { %240 = vmatmul.msk.bf16.vlgmr.msra.gmra.mxu0 %vm84_vm2, %v59_v15 }
  0xfe   :  { %v100_v21 = vpop.f32.mrf.mxu0 }
  0xff   :  { %v101_v22 = vadd.f32 %v290_v20, %v100_v21 }
 0x101   :  { %v104_v23 = vmax.f32 %v101_v22, 0.0 }
 0x103   :  { %v105_v24 = vpack.c.bf16 %v104_v23, %v104_v23 }
 0x105   :  { %257 = vmatmul.msk.bf16.vlgmr.msra.gmra.mxu1 %vm142_vm3, %v105_v24 }
 0x106   :  { %v102_v25 = vpop.f32.mrf.mxu0 }
 0x182   :  { %v155_v29 = vpop.f32.mrf.mxu1 }
 0x183   :  { %v156_v30 = vadd.f32 %v291_v28, %v155_v29 }
 0x185   :  { %v159_v31 = vmax.f32 %v156_v30, 0.0 }
 0x187   :  { %v160_v32 = vpack.c.bf16 %v159_v31, %v159_v31 }
 0x189   :  { %274 = vmatmul.msk.bf16.vlgmr.msra.gmra.mxu2 %vm142_vm3, %v160_v32 }
 0x18a   :  { %v157_v33 = vpop.f32.mrf.mxu1 }
 0x20c   :  { %v209_v35 = vpop.f32.mrf.mxu2 }
 0x20d   :  { %v210_v36 = vadd.f32 %v292_v34, %v209_v35 }
 0x20f   :  { %214 = vst.msk [vmem:[#allocation5] sm:$0x3] %vm213_vm4, %v210_v36 }
 0x210   :  { %225 = dma.vmem_to_hbm [thread:$0]  %s221_s13, 32, %s223_s6, [#allocation4]  }
 0x214   :  { %v211_v37 = vpop.f32.mrf.mxu2 }
 0x215   :  { %343 = dma.done.wait [#allocation4], 32  }
 0x216   :  { %344 = vsyncadd [#allocation4], 4294967264 }
 0x217   :  { %230 = vsyncpa [#allocation3], 1 }
 0x218   :  { %231 = vsyncpa [#allocation4], 1 }

</bundles_post_ra>
